<compile_context>
chip_gen: v7x
topology: tpu7x:2x2x1
jax: 0.10.0
libtpu: 0.0.40
codegen_flags: <defaults>
</compile_context>

<pallas_src>
from typing import NamedTuple

import jax
import jax.numpy as jnp
from jax.experimental import pallas as pl
from jax.experimental.pallas import tpu as pltpu


class SimpleCameraModel(NamedTuple):
    """JAX stand-in for the PyTorch SimpleCameraModel container."""
    focal_length: jax.Array          # (B, 1)
    cx: jax.Array                    # (B, 1)
    cy: jax.Array                    # (B, 1)
    a: jax.Array                     # (B, 1, num_views, 3)  (rot_forward tiled)
    b: jax.Array                     # (B, 1, num_views, 3)  (rot_up tiled)
    translation: jax.Array           # (B, 1, num_views, 3)
    world_points: jax.Array          # pass-through
    true_projected_points: jax.Array # pass-through


def _round_up(x: int, m: int) -> int:
    return ((x + m - 1) // m) * m


# Double-buffered output-tile VMEM budget (bytes) and explicit scoped limit.
_VMEM_OUT_BUDGET = 16 * 1024 * 1024
_VMEM_LIMIT_BYTES = 32 * 1024 * 1024


def _broadcast_params_kernel(p_ref, o_ref):
    # p_ref: (1, L) packed parameter row; o_ref: (tile_b, L) output tile.
    # One lane-dense, unmasked full-vreg store stream (L is a multiple of 128).
    o_ref[...] = jnp.broadcast_to(p_ref[...], o_ref.shape)


def broadcast_param_row(param_row: jax.Array, batch_size: int,
                        *, tile_b_max: int = 4096) -> jax.Array:
    """Broadcast a (1, L) f32 row (L % 128 == 0) to (batch_size, L) rows."""
    _, lanes = param_row.shape
    assert lanes % 128 == 0, "packed parameter row must be lane-dense"

    # Pad the batch only to the 8-sublane granule (NOT to tile_b): the last
    # grid step is allowed to be a partial tile.
    b8 = _round_up(batch_size, 8)

    # VMEM-aware batch tile: two output buffers of (tile_b, lanes) f32 must fit
    # the budget; also a multiple of 8 sublanes and no bigger than the batch.
    vmem_cap = max(8, (_VMEM_OUT_BUDGET // (lanes * 4 * 2)) // 8 * 8)
    tile_b = max(8, (min(tile_b_max, vmem_cap, b8) // 8) * 8)

    # If a single tile would cover a reasonably large batch, split into two
    # parallel grid steps so both TensorCores (v7x megacore) get work.
    if b8 > 16 and b8 <= tile_b:
        tile_b = max(8, _round_up(pl.cdiv(b8, 2), 8))

    grid = (pl.cdiv(b8, tile_b),)

    out = pl.pallas_call(
        _broadcast_params_kernel,
        out_shape=jax.ShapeDtypeStruct((b8, lanes), jnp.float32),
        grid_spec=pltpu.PrefetchScalarGridSpec(
            num_scalar_prefetch=0,
            grid=grid,
            in_specs=[pl.BlockSpec((1, lanes), lambda i: (0, 0))],
            out_specs=pl.BlockSpec((tile_b, lanes), lambda i: (i, 0)),
        ),
        compiler_params=pltpu.CompilerParams(
            dimension_semantics=("parallel",),
            vmem_limit_bytes=_VMEM_LIMIT_BYTES),
    )(param_row)

    # Only the (at most 7-row) sublane padding is sliced off; when the batch is
    # already 8-aligned this is a no-op (no extra HBM round trip).
    if b8 != batch_size:
        out = out[:batch_size]
    return out


class SimpleCameraModelInitialGuess:
    """Deterministically-initialized JAX/Pallas port of the PyTorch module."""

    def __init__(self, num_views: int):
        self.num_views = num_views
        # Same initial values as the PyTorch module's __init__.
        self.focal_length = jnp.array([[60.0]], dtype=jnp.float32)           # (1, 1)
        self.cx = jnp.array([[320.0]], dtype=jnp.float32)                    # (1, 1)
        self.cy = jnp.array([[240.0]], dtype=jnp.float32)                    # (1, 1)
        self.rot_forward = jnp.tile(
            jnp.array([1.0, 0.0, 0.0], dtype=jnp.float32).reshape(1, 1, 1, 3),
            (1, 1, num_views, 1))                                            # (1, 1, V, 3)
        self.rot_up = jnp.tile(
            jnp.array([0.0, 1.0, 0.0], dtype=jnp.float32).reshape(1, 1, 1, 3),
            (1, 1, num_views, 1))                                            # (1, 1, V, 3)
        self.translation = jnp.zeros((1, 1, num_views, 3), dtype=jnp.float32)

    def _packed_param_row(self) -> jax.Array:
        """Concatenate all parameters into one lane-dense (1, L) f32 row."""
        v = self.num_views
        row = jnp.concatenate(
            [
                self.focal_length.reshape(1, 1),
                self.cx.reshape(1, 1),
                self.cy.reshape(1, 1),
                self.rot_forward.reshape(1, 3 * v),
                self.rot_up.reshape(1, 3 * v),
                self.translation.reshape(1, 3 * v),
            ],
            axis=1,
        )                                              # (1, 3 + 9V)
        payload = 3 + 9 * v
        lanes = _round_up(payload, 128)
        if lanes > payload:
            row = jnp.pad(row, ((0, 0), (0, lanes - payload)))
        return row

    def __call__(self, projected_points: jax.Array,
                 world_points: jax.Array) -> SimpleCameraModel:
        batch_size = projected_points.shape[0]
        v = self.num_views

        row = self._packed_param_row()                 # (1, L), L % 128 == 0
        slab = broadcast_param_row(row, batch_size)    # (B, L)

        # Only two slices of the big slab (scalar head + vector body); the six
        # logical fields are carved from these small arrays (cheap / fusable).
        head = slab[:, 0:3]                                        # (B, 3)
        vecs = slab[:, 3:3 + 9 * v].reshape(batch_size, 3, 1, v, 3)

        focal = head[:, 0:1]
        cx = head[:, 1:2]
        cy = head[:, 2:3]
        rf = vecs[:, 0]                                            # (B, 1, V, 3)
        ru = vecs[:, 1]
        tr = vecs[:, 2]

        return SimpleCameraModel(
            focal_length=focal,
            cx=cx,
            cy=cy,
            a=rf,
            b=ru,
            translation=tr,
            world_points=world_points,
            true_projected_points=projected_points,
        )


if __name__ == "__main__":
    batch = 2
    num_views = 8
    num_points = 16

    key = jax.random.PRNGKey(0)
    k1, k2 = jax.random.split(key)
    # projected_points: (batch, num_views, num_points, 2); world_points: (batch, num_points, 3)
    projected_points = jax.random.normal(k1, (batch, num_views, num_points, 2),
                                         dtype=jnp.float32)
    world_points = jax.random.normal(k2, (batch, num_points, 3), dtype=jnp.float32)

    module = SimpleCameraModelInitialGuess(num_views)
    model = module(projected_points, world_points)
    jax.block_until_ready(model)

    # Correctness checks vs. the PyTorch semantics (tiling of the parameters).
    assert model.focal_length.shape == (batch, 1)
    assert bool(jnp.all(model.focal_length == 60.0))
    assert model.cx.shape == (batch, 1)
    assert bool(jnp.all(model.cx == 320.0))
    assert model.cy.shape == (batch, 1)
    assert bool(jnp.all(model.cy == 240.0))
    assert model.a.shape == (batch, 1, num_views, 3)
    assert bool(jnp.all(model.a == jnp.broadcast_to(
        jnp.array([1.0, 0.0, 0.0], jnp.float32), (batch, 1, num_views, 3))))
    assert model.b.shape == (batch, 1, num_views, 3)
    assert bool(jnp.all(model.b == jnp.broadcast_to(
        jnp.array([0.0, 1.0, 0.0], jnp.float32), (batch, 1, num_views, 3))))
    assert model.translation.shape == (batch, 1, num_views, 3)
    assert bool(jnp.all(model.translation == 0.0))
    assert bool(jnp.all(model.world_points == world_points))
    assert bool(jnp.all(model.true_projected_points == projected_points))

    print("KERNEL_OK")
</pallas_src>

<mosaic_0001>
module attributes {stable_mosaic.version = 11 : i64} {
  func.func @_broadcast_params_kernel(%arg0: i32, %arg1: memref<1x128xf32, #tpu.memory_space<vmem>>, %arg2: memref<8x128xf32, #tpu.memory_space<vmem>>) attributes {dimension_semantics = [#tpu.dimension_semantics<parallel>], iteration_bounds = array<i64: 1>, scalar_prefetch = 0 : i64, scratch_operands = 0 : i64, tpu.core_type = #tpu.core_type<tc>, window_params = [{pipeline_mode = #tpu.pipeline_mode<synchronous>, transform_indices = @transform_0, window_bounds = array<i64: 1, 128>}, {transform_indices = @transform_1, window_bounds = array<i64: 8, 128>}]} {
    %c0 = arith.constant 0 : index
    %c0_0 = arith.constant 0 : index
    %0 = vector.load %arg1[%c0, %c0_0] : memref<1x128xf32, #tpu.memory_space<vmem>>, vector<1x128xf32>
    %1 = vector.shape_cast %0 : vector<1x128xf32> to vector<1x128xf32>
    %2 = vector.broadcast %1 : vector<1x128xf32> to vector<8x128xf32>
    %c0_1 = arith.constant 0 : index
    %c0_2 = arith.constant 0 : index
    %3 = vector.load %arg2[%c0_1, %c0_2] : memref<8x128xf32, #tpu.memory_space<vmem>>, vector<8x128xf32>
    tpu.vector_store %arg2[%c0_1, %c0_2], %2 {strides = array<i32>} : memref<8x128xf32, #tpu.memory_space<vmem>>, vector<8x128xf32>,
    return
  }
  func.func @transform_0(%arg0: i32) -> (i32, i32) {
    %c0_i32 = arith.constant 0 : i32
    %c0_i32_0 = arith.constant 0 : i32
    %c0_i32_1 = arith.constant 0 : i32
    return %c0_i32, %c0_i32_0 : i32, i32
  }
  func.func @transform_1(%arg0: i32) -> (i32, i32) {
    %c0_i32 = arith.constant 0 : i32
    %c0_i32_0 = arith.constant 0 : i32
    return %arg0, %c0_i32 : i32, i32
  }
}

</mosaic_0001>

<bundles_post_ra>
// kernel: tpu_custom_call.1
= control target key start
LH: loop header
LB: loop body
LE: loop exit
PB: predicated region body
PF: predicated region fallthrough
CT: control target
= control target key end

     0   :  { %6 = vsyncpa [#allocation3], 0  ;;  %s131_s0 = inlined_call_operand.hbm [shape: f32[1,128], index: 0, kind: input, shape index: {}]   ;;  %s132_s1 = inlined_call_operand.hbm [shape: f32[8,128], index: 1, kind: output, shape index: {}]  }
   0x1   :  { %7 = vsyncpa [#allocation4], 0  ;;  %s95_s6 = smov [#allocation2]   ;;  %s47_s10 = scalar_lea.hbm %s131_s0, 16 }
   0x2   :  { %s14_s7 = sshll.u32 %s95_s6, 4  ;;  %p48_p0 = scmp.ne.s32.totalorder %s131_s0, %s47_s10  ;;  %s15_s7 = int_to_ptr.vmem [resolvable:$true] %s14_s7 }
   0x3   :  { %p51_p1 = scmp.lt.u32.totalorder %s47_s10, %s131_s0 }
   0x5   :  { %p53_p2 = pnand %p51_p1, %p48_p0 }
   0x7   :  { %56 = shalt.err (!%p53_p2)
}
   0x8   :  { %s57_s15 = scalar_lea.vmem %s15_s7, 16  ;;  %s61_s16 = scalar_lea.vmem %s15_s7, 32 }
   0x9   :  { %p58_p3 = scmp.ne.s32.totalorder %s15_s7, %s57_s15  ;;  %p62_p4 = scmp.lt.s32.totalorder %s15_s7, %s15_s7 }
   0xa   :  { %p63_p5 = scmp.lt.s32.totalorder %s61_s16, %s57_s15 }
   0xc   :  { %p64_p6 = por %p63_p5, %p62_p4 }
   0xe   :  { %p65_p7 = pnand %p64_p6, %p58_p3 }
  0x10   :  { %68 = shalt.err (!%p65_p7)
}
  0x11   :  { %17 = dma.hbm_to_vmem [thread:$0]  %s131_s0, 16, %s15_s7, [#allocation3]  }
  0x12   :  { %91 = dma.done.wait [#allocation3], 16  }
  0x13   :  { %92 = vsyncadd [#allocation3], 4294967280  ;;  %s96_s19 = smov [#allocation5]   ;;  %v44_v0 = vld [vmem:[#allocation2] ss:$0 sm:$0xff] }
  0x14   :  { %s35_s20 = sshll.u32 %s96_s19, 4  ;;  %28 = vst [vmem:[#allocation5] sm:$0xff] %v44_v0  ;;  %s36_s20 = int_to_ptr.vmem [resolvable:$true] %s35_s20 }
  0x15   :  { %s69_s21 = scalar_lea.vmem %s36_s20, 128  ;;  %p74_p9 = scmp.lt.s32.totalorder %s36_s20, %s36_s20 }
  0x16   :  { %p70_p8 = scmp.ne.s32.totalorder %s36_s20, %s69_s21  ;;  %p75_p10 = scmp.lt.s32.totalorder %s69_s21, %s69_s21 }
  0x18   :  { %p76_p11 = por %p75_p10, %p74_p9 }
  0x1a   :  { %p77_p12 = pnand %p76_p11, %p70_p8 }
  0x1c   :  { %80 = shalt.err (!%p77_p12)
}
  0x1d   :  { %s81_s24 = scalar_lea.hbm %s132_s1, 128 }
  0x1e   :  { %p82_p13 = scmp.ne.s32.totalorder %s132_s1, %s81_s24  ;;  %p85_p0 = scmp.lt.u32.totalorder %s81_s24, %s132_s1 }
  0x20   :  { %p87_p1 = pnand %p85_p0, %p82_p13 }
  0x22   :  { %90 = shalt.err (!%p87_p1)
}
  0x23   :  { %38 = dma.vmem_to_hbm [thread:$0]  %s36_s20, 128, %s132_s1, [#allocation4]  }
  0x24   :  { %93 = dma.done.wait [#allocation4], 128  }
  0x25   :  { %94 = vsyncadd [#allocation4], 4294967168 }
  0x26   :  { %42 = vsyncpa [#allocation3], 1 }
  0x27   :  { %43 = vsyncpa [#allocation4], 1 }

</bundles_post_ra>
